<compile_context>
chip_gen: v5e
topology: v5e:2x2
jax: 0.10.0
libtpu: 0.0.40
codegen_flags: <defaults>
</compile_context>

<pallas_src>
import functools

import jax
import jax.numpy as jnp
from jax.experimental import pallas as pl
from jax.experimental.pallas import tpu as pltpu

_LANE = 128


def _round_up(x, m):
    return ((x + m - 1) // m) * m


def _mcqrnn_kernel(xm_ref, xi_ref, spmW_ref, iW_ref, spoutW_ref, bh_ref, bo_ref,
                   o_ref):
    cdt = spmW_ref.dtype                      # compute dtype (bf16 on v6e/v7x, f32 ok)
    xm = xm_ref[...].astype(cdt)              # [1, TB]
    xi = xi_ref[...].astype(cdt)              # [I, TB]

    # Monotone rank-1 term + hidden bias: pure VPU broadcast multiply/add.
    acc = spmW_ref[...] * xm + bh_ref[...]    # [H,1]*[1,TB] + [H,1] -> [H, TB]

    # Non-monotone term: K = I unrolled broadcast FMAs on the VPU.
    iW = iW_ref[...]                          # [H, I]
    for j in range(xi_ref.shape[0]):
        acc = acc + iW[:, j:j + 1] * xi[j:j + 1, :]

    hidden = jnp.tanh(acc)                    # [H, TB]  (EUP; bf16-native on v6e/v7x)
    # TODO(synk): nn.Dropout(p=0.4) is identity at inference; training-mode dropout
    # would need pltpu.prng_seed + pltpu.stateful_bernoulli.

    # Output layer (N=1): bf16 elementwise scale, f32 accumulation on the XLU.
    prod = hidden * spoutW_ref[...]           # [H, TB]
    out = jnp.sum(prod.astype(jnp.float32), axis=0, keepdims=True)   # [1, TB] f32
    o_ref[...] = out + bo_ref[0, 0]


@functools.partial(
    jax.jit,
    static_argnames=("block_b", "input_dtype", "compute_dtype", "pre_transposed"))
def mcqrnn_forward(x_m, x_i, m_matrix, i_matrix, out_m, bias_h, bias_o, *,
                   block_b=16384, input_dtype=jnp.float32,
                   compute_dtype=jnp.bfloat16, pre_transposed=False):
    """Pallas MCQRNN forward.

    x_m: [B] (or [1, B] / [B] if pre_transposed), x_i: [B, I] (or [I, B] if
    pre_transposed).  Returns [B] float32.
    """
    if pre_transposed:
        I, B = x_i.shape
        xi_t = x_i                              # [I, B] already lane-major
        xm_t = x_m.reshape(1, B)
    else:
        B, I = x_i.shape
        xi_t = x_i.T                            # [I, B]
        xm_t = x_m.reshape(1, B)
    H = m_matrix.shape[0]

    # Lane-aligned batch tile.  Cap at half the (lane-padded) batch so the
    # "parallel" grid has >=2 steps (v7x: shards across both TensorCores).
    tb = max(_LANE, (int(block_b) // _LANE) * _LANE)
    bp_min = _round_up(B, _LANE)
    if bp_min >= 2 * _LANE:
        tb = min(tb, max(_LANE, (bp_min // 2) // _LANE * _LANE))
    tb = min(tb, bp_min)
    Bp = _round_up(B, tb)
    grid = (Bp // tb,)
    pad = Bp - B

    # Streamed inputs (batch on lanes, zero-padded).
    xm_p = jnp.pad(xm_t.astype(input_dtype), ((0, 0), (0, pad)))
    xi_p = jnp.pad(xi_t.astype(input_dtype), ((0, 0), (0, pad)))

    # Small parameters: softplus evaluated ONCE, in f32, then cast to the compute
    # dtype.  They stay VMEM-resident across grid steps.
    f32 = jnp.float32
    cdt = compute_dtype
    sp_mW = jax.nn.softplus(m_matrix.astype(f32)).reshape(H, 1).astype(cdt)
    sp_outW = jax.nn.softplus(out_m.astype(f32)).reshape(H, 1).astype(cdt)
    iW = i_matrix.astype(cdt)                   # [H, I]
    bh = bias_h.astype(cdt).reshape(H, 1)
    bo = bias_o.astype(f32).reshape(1, 1)       # SMEM scalar (output stays f32)

    out = pl.pallas_call(
        _mcqrnn_kernel,
        out_shape=jax.ShapeDtypeStruct((1, Bp), jnp.float32),
        grid=grid,
        in_specs=[
            pl.BlockSpec((1, tb), lambda i: (0, i)),        # x_m   (streamed)
            pl.BlockSpec((I, tb), lambda i: (0, i)),        # x_i   (streamed)
            pl.BlockSpec((H, 1), lambda i: (0, 0)),         # softplus(m)  (resident)
            pl.BlockSpec((H, I), lambda i: (0, 0)),         # i_matrix     (resident)
            pl.BlockSpec((H, 1), lambda i: (0, 0)),         # softplus(out)(resident)
            pl.BlockSpec((H, 1), lambda i: (0, 0)),         # bias_h       (resident)
            pl.BlockSpec(memory_space=pltpu.MemorySpace.SMEM),  # bias_o scalar
        ],
        out_specs=pl.BlockSpec((1, tb), lambda i: (0, i)),
        compiler_params=pltpu.CompilerParams(
            dimension_semantics=("parallel",),              # v7x: 2 TCs share the grid
        ),
    )(xm_p, xi_p, sp_mW, iW, sp_outW, bh, bo)

    return out[0, :B]


def _reference(x_m, x_i, m_matrix, i_matrix, out_m, bias_h, bias_o):
    sp = jax.nn.softplus
    h = jnp.tanh(x_m[:, None] @ sp(m_matrix).T + x_i @ i_matrix.T + bias_h[None, :])
    return (h @ sp(out_m).T + bias_o).reshape(-1)


if __name__ == "__main__":
    # Small shapes consistent with the module:
    #   m_input_size = 1 (scalar quantile per example), i_input_size = 4,
    #   hidden_size = 32, batch = 8.
    B, M_IN, I_IN, H = 8, 1, 4, 32

    key = jax.random.PRNGKey(0)
    k_m, k_i, k_o, k_xm, k_xi = jax.random.split(key, 5)

    m_matrix = jax.random.normal(k_m, (H, M_IN), dtype=jnp.float32)
    i_matrix = jax.random.normal(k_i, (H, I_IN), dtype=jnp.float32)
    out_m = jax.random.normal(k_o, (1, H), dtype=jnp.float32)
    bias_h = jnp.zeros((H,), dtype=jnp.float32)
    bias_o = jnp.zeros((1,), dtype=jnp.float32)

    x_m = jax.random.uniform(k_xm, (B,), dtype=jnp.float32)        # quantile levels
    x_i = jax.random.normal(k_xi, (B, I_IN), dtype=jnp.float32)    # covariates

    # 1) f32-compute path: exact semantics check against the reference.
    out = mcqrnn_forward(x_m, x_i, m_matrix, i_matrix, out_m, bias_h, bias_o,
                         compute_dtype=jnp.float32)
    out = jax.block_until_ready(out)
    ref = _reference(x_m, x_i, m_matrix, i_matrix, out_m, bias_h, bias_o)
    assert out.shape == (B,)
    assert jnp.allclose(out, ref, atol=1e-5, rtol=1e-5), (out, ref)

    # 2) Multi-step pipelined grid (B not a tile multiple) + pre-transposed inputs
    #    (caller supplies x_i as [I, B], skipping the wrapper transpose copy).
    B2 = 300
    k_xm2, k_xi2 = jax.random.split(jax.random.PRNGKey(1))
    x_m2 = jax.random.uniform(k_xm2, (B2,), dtype=jnp.float32)
    x_i2 = jax.random.normal(k_xi2, (B2, I_IN), dtype=jnp.float32)
    ref2 = _reference(x_m2, x_i2, m_matrix, i_matrix, out_m, bias_h, bias_o)

    out2 = mcqrnn_forward(x_m2, jnp.asarray(x_i2.T), m_matrix, i_matrix, out_m,
                          bias_h, bias_o, block_b=128,
                          compute_dtype=jnp.float32, pre_transposed=True)
    out2 = jax.block_until_ready(out2)
    assert out2.shape == (B2,)
    assert jnp.allclose(out2, ref2, atol=1e-5, rtol=1e-5), (out2, ref2)

    # 3) Default fast path: bf16 compute (v6e/v7x VALU/EUP lever) + bf16 input
    #    streaming.  Precision is intentionally traded for throughput, so compare
    #    against the f32 reference on bf16-rounded inputs with a loose tolerance
    #    (exactness is covered by tests 1 and 2).
    out3 = mcqrnn_forward(x_m2, x_i2, m_matrix, i_matrix, out_m, bias_h, bias_o,
                          input_dtype=jnp.bfloat16)
    out3 = jax.block_until_ready(out3)
    ref3 = _reference(x_m2.astype(jnp.bfloat16).astype(jnp.float32),
                      x_i2.astype(jnp.bfloat16).astype(jnp.float32),
                      m_matrix, i_matrix, out_m, bias_h, bias_o)
    assert out3.shape == (B2,)
    assert jnp.allclose(out3, ref3, atol=3e-1, rtol=5e-2), (
        float(jnp.max(jnp.abs(out3 - ref3))))

    print("KERNEL_OK")
</pallas_src>

<mosaic_0001>
module attributes {stable_mosaic.version = 11 : i64} {
  func.func @_mcqrnn_kernel(%arg0: i32, %arg1: memref<1x128xf32, #tpu.memory_space<vmem>>, %arg2: memref<4x128xf32, #tpu.memory_space<vmem>>, %arg3: memref<32x1xf32, #tpu.memory_space<vmem>>, %arg4: memref<32x4xf32, #tpu.memory_space<vmem>>, %arg5: memref<32x1xf32, #tpu.memory_space<vmem>>, %arg6: memref<32x1xf32, #tpu.memory_space<vmem>>, %arg7: memref<1x1xf32, #tpu.memory_space<smem>>, %arg8: memref<1x128xf32, #tpu.memory_space<vmem>>) attributes {dimension_semantics = [#tpu.dimension_semantics<parallel>], iteration_bounds = array<i64: 1>, scalar_prefetch = 0 : i64, scratch_operands = 0 : i64, tpu.core_type = #tpu.core_type<tc>, window_params = [{transform_indices = @transform_0, window_bounds = array<i64: 1, 128>}, {transform_indices = @transform_1, window_bounds = array<i64: 4, 128>}, {pipeline_mode = #tpu.pipeline_mode<synchronous>, transform_indices = @transform_2, window_bounds = array<i64: 32, 1>}, {pipeline_mode = #tpu.pipeline_mode<synchronous>, transform_indices = @transform_3, window_bounds = array<i64: 32, 4>}, {pipeline_mode = #tpu.pipeline_mode<synchronous>, transform_indices = @transform_4, window_bounds = array<i64: 32, 1>}, {pipeline_mode = #tpu.pipeline_mode<synchronous>, transform_indices = @transform_5, window_bounds = array<i64: 32, 1>}, {transform_indices = @transform_6, window_bounds = array<i64: 1, 1>}, {transform_indices = @transform_7, window_bounds = array<i64: 1, 128>}]} {
    %c0 = arith.constant 0 : index
    %c0_0 = arith.constant 0 : index
    %0 = vector.load %arg1[%c0, %c0_0] : memref<1x128xf32, #tpu.memory_space<vmem>>, vector<1x128xf32>
    %c0_1 = arith.constant 0 : index
    %c0_2 = arith.constant 0 : index
    %1 = vector.load %arg2[%c0_1, %c0_2] : memref<4x128xf32, #tpu.memory_space<vmem>>, vector<4x128xf32>
    %c0_3 = arith.constant 0 : index
    %c0_4 = arith.constant 0 : index
    %2 = vector.load %arg3[%c0_3, %c0_4] : memref<32x1xf32, #tpu.memory_space<vmem>>, vector<32x1xf32>
    %3 = vector.broadcast %2 : vector<32x1xf32> to vector<32x128xf32>
    %4 = vector.broadcast %0 : vector<1x128xf32> to vector<32x128xf32>
    %5 = arith.mulf %3, %4 : vector<32x128xf32>
    %c0_5 = arith.constant 0 : index
    %c0_6 = arith.constant 0 : index
    %6 = vector.load %arg6[%c0_5, %c0_6] : memref<32x1xf32, #tpu.memory_space<vmem>>, vector<32x1xf32>
    %7 = vector.broadcast %6 : vector<32x1xf32> to vector<32x128xf32>
    %8 = arith.addf %5, %7 : vector<32x128xf32>
    %c0_7 = arith.constant 0 : index
    %c0_8 = arith.constant 0 : index
    %9 = vector.load %arg4[%c0_7, %c0_8] : memref<32x4xf32, #tpu.memory_space<vmem>>, vector<32x4xf32>
    %10 = vector.extract_strided_slice %9 {offsets = [0, 0], sizes = [32, 1], strides = [1, 1]} : vector<32x4xf32> to vector<32x1xf32>
    %11 = vector.extract_strided_slice %1 {offsets = [0, 0], sizes = [1, 128], strides = [1, 1]} : vector<4x128xf32> to vector<1x128xf32>
    %12 = vector.broadcast %10 : vector<32x1xf32> to vector<32x128xf32>
    %13 = vector.broadcast %11 : vector<1x128xf32> to vector<32x128xf32>
    %14 = arith.mulf %12, %13 : vector<32x128xf32>
    %15 = arith.addf %8, %14 : vector<32x128xf32>
    %16 = vector.extract_strided_slice %9 {offsets = [0, 1], sizes = [32, 1], strides = [1, 1]} : vector<32x4xf32> to vector<32x1xf32>
    %17 = vector.extract_strided_slice %1 {offsets = [1, 0], sizes = [1, 128], strides = [1, 1]} : vector<4x128xf32> to vector<1x128xf32>
    %18 = vector.broadcast %16 : vector<32x1xf32> to vector<32x128xf32>
    %19 = vector.broadcast %17 : vector<1x128xf32> to vector<32x128xf32>
    %20 = arith.mulf %18, %19 : vector<32x128xf32>
    %21 = arith.addf %15, %20 : vector<32x128xf32>
    %22 = vector.extract_strided_slice %9 {offsets = [0, 2], sizes = [32, 1], strides = [1, 1]} : vector<32x4xf32> to vector<32x1xf32>
    %23 = vector.extract_strided_slice %1 {offsets = [2, 0], sizes = [1, 128], strides = [1, 1]} : vector<4x128xf32> to vector<1x128xf32>
    %24 = vector.broadcast %22 : vector<32x1xf32> to vector<32x128xf32>
    %25 = vector.broadcast %23 : vector<1x128xf32> to vector<32x128xf32>
    %26 = arith.mulf %24, %25 : vector<32x128xf32>
    %27 = arith.addf %21, %26 : vector<32x128xf32>
    %28 = vector.extract_strided_slice %9 {offsets = [0, 3], sizes = [32, 1], strides = [1, 1]} : vector<32x4xf32> to vector<32x1xf32>
    %29 = vector.extract_strided_slice %1 {offsets = [3, 0], sizes = [1, 128], strides = [1, 1]} : vector<4x128xf32> to vector<1x128xf32>
    %30 = vector.broadcast %28 : vector<32x1xf32> to vector<32x128xf32>
    %31 = vector.broadcast %29 : vector<1x128xf32> to vector<32x128xf32>
    %32 = arith.mulf %30, %31 : vector<32x128xf32>
    %33 = arith.addf %27, %32 : vector<32x128xf32>
    %34 = math.tanh %33 : vector<32x128xf32>
    %c0_9 = arith.constant 0 : index
    %c0_10 = arith.constant 0 : index
    %35 = vector.load %arg5[%c0_9, %c0_10] : memref<32x1xf32, #tpu.memory_space<vmem>>, vector<32x1xf32>
    %36 = vector.broadcast %35 : vector<32x1xf32> to vector<32x128xf32>
    %37 = arith.mulf %34, %36 : vector<32x128xf32>
    %cst = arith.constant dense<0.000000e+00> : vector<128xf32>
    %38 = vector.multi_reduction <add>, %37, %cst [0] : vector<32x128xf32> to vector<128xf32>
    %39 = vector.shape_cast %38 : vector<128xf32> to vector<1x128xf32>
    %c0_11 = arith.constant 0 : index
    %c0_12 = arith.constant 0 : index
    %40 = memref.load %arg7[%c0_11, %c0_12] : memref<1x1xf32, #tpu.memory_space<smem>>
    %41 = vector.broadcast %40 : f32 to vector<1x128xf32>
    %42 = arith.addf %39, %41 : vector<1x128xf32>
    %c0_13 = arith.constant 0 : index
    %c0_14 = arith.constant 0 : index
    %43 = vector.load %arg8[%c0_13, %c0_14] : memref<1x128xf32, #tpu.memory_space<vmem>>, vector<1x128xf32>
    tpu.vector_store %arg8[%c0_13, %c0_14], %42 {strides = array<i32>} : memref<1x128xf32, #tpu.memory_space<vmem>>, vector<1x128xf32>,
    return
  }
  func.func @transform_0(%arg0: i32) -> (i32, i32) {
    %c0_i32 = arith.constant 0 : i32
    %c0_i32_0 = arith.constant 0 : i32
    return %c0_i32, %arg0 : i32, i32
  }
  func.func @transform_1(%arg0: i32) -> (i32, i32) {
    %c0_i32 = arith.constant 0 : i32
    %c0_i32_0 = arith.constant 0 : i32
    return %c0_i32, %arg0 : i32, i32
  }
  func.func @transform_2(%arg0: i32) -> (i32, i32) {
    %c0_i32 = arith.constant 0 : i32
    %c0_i32_0 = arith.constant 0 : i32
    %c0_i32_1 = arith.constant 0 : i32
    return %c0_i32, %c0_i32_0 : i32, i32
  }
  func.func @transform_3(%arg0: i32) -> (i32, i32) {
    %c0_i32 = arith.constant 0 : i32
    %c0_i32_0 = arith.constant 0 : i32
    %c0_i32_1 = arith.constant 0 : i32
    return %c0_i32, %c0_i32_0 : i32, i32
  }
  func.func @transform_4(%arg0: i32) -> (i32, i32) {
    %c0_i32 = arith.constant 0 : i32
    %c0_i32_0 = arith.constant 0 : i32
    %c0_i32_1 = arith.constant 0 : i32
    return %c0_i32, %c0_i32_0 : i32, i32
  }
  func.func @transform_5(%arg0: i32) -> (i32, i32) {
    %c0_i32 = arith.constant 0 : i32
    %c0_i32_0 = arith.constant 0 : i32
    %c0_i32_1 = arith.constant 0 : i32
    return %c0_i32, %c0_i32_0 : i32, i32
  }
  func.func @transform_6(%arg0: i32) -> (i32, i32) {
    %c0_i32 = arith.constant 0 : i32
    %c0_i32_0 = arith.constant 0 : i32
    %c0_i32_1 = arith.constant 0 : i32
    return %c0_i32, %c0_i32_0 : i32, i32
  }
  func.func @transform_7(%arg0: i32) -> (i32, i32) {
    %c0_i32 = arith.constant 0 : i32
    %c0_i32_0 = arith.constant 0 : i32
    return %c0_i32, %arg0 : i32, i32
  }
}

</mosaic_0001>

<bundles_post_ra>
// kernel: ne.0
= control target key start
LH: loop header
LB: loop body
LE: loop exit
PB: predicated region body
PF: predicated region fallthrough
CT: control target
= control target key end

     0   :  { %v16_v2 = vmov 0   ;;  %s41_s0 = inlined_call_operand.vmem [shape: f32[32,1], index: 0, kind: input, shape index: {}, may-alias: {0,1}]   ;;  %s42_s1 = inlined_call_operand.vmem [shape: f32[32,1], index: 1, kind: input, shape index: {}, may-alias: {0,1}]   ;;  %s43_s2 = inlined_call_operand.vmem [shape: pred[32,1], index: 2, kind: output, shape index: {}]  }
   0x1   :  { %v3_v0 = vld [vmem:[%s41_s0] sm:$0x1] }
   0x2   :  { %v4_v1 = vld [vmem:[%s42_s1] sm:$0x1] }
   0x3   :  { %vm7_vm0 = vcmp.ne.f32.partialorder %v3_v0, %v4_v1 }
   0x4   :  { %v8_v3 = vsel %vm7_vm0, 1, %v16_v2 }
   0x5   :  { %v10_v4 = vpack.c.b16 0, %v8_v3 }
   0x7   :  { %v11_v5 = vpack.c.b8 0, %v10_v4 }
   0x9   :  { %14 = vst [vmem:[%s43_s2] sm:$0x1] %v11_v5 }

// kernel: mcqrnn_forward.1
= control target key start
LH: loop header
LB: loop body
LE: loop exit
PB: predicated region body
PF: predicated region fallthrough
CT: control target
= control target key end

     0   :  { %v274_v0 = vmov 0   ;;  %v275_v13 = vmov 1   ;;  %v276_v14 = vmov 2   ;;  %v277_v15 = vmov 3   ;;  %s378_s2 = inlined_call_operand.vmem [shape: f32[32,1], index: 2, kind: input, shape index: {}]   ;;  %s379_s5 = inlined_call_operand.vmem [shape: f32[32,1], index: 5, kind: input, shape index: {}]   ;;  %s380_s0 = inlined_call_operand.vmem [shape: f32[1,128], index: 0, kind: input, shape index: {}]   ;;  %s381_s3 = inlined_call_operand.vmem [shape: f32[32,4], index: 3, kind: input, shape index: {}]   ;;  %s382_s4 = inlined_call_operand.vmem [shape: f32[32,1], index: 4, kind: input, shape index: {}]   ;;  %s383_s1 = inlined_call_operand.vmem [shape: f32[4,128], index: 1, kind: input, shape index: {}]   ;;  %s384_s6 = inlined_call_operand.<no memory space> [shape: f32[1,1], index: 6, kind: input, shape index: {}]   ;;  %s385_s7 = inlined_call_operand.vmem [shape: f32[1,128], index: 7, kind: output, shape index: {}]  }
   0x1   :  { %250 = vset.pattern.permute.xlu1 %v274_v0  ;;  %249 = vset.pattern.permute.xlu0 %v274_v0  ;;  %v31_v1 = vld [vmem:[%s378_s2 + $0x10] sm:$0xff]  ;;  %v29_v2 = vld [vmem:[%s378_s2] sm:$0xff]  ;;  %v32_v4 = vld [vmem:[%s378_s2 + $0x18] sm:$0xff] }
   0x2   :  { %v60_v3 = vld [vmem:[%s379_s5] sm:$0xff]  ;;  %251 = vset.pattern.permute.xlu2 %v274_v0  ;;  %45 = vperm.xlu1 %250, %v31_v1   ;;  %v30_v5 = vld [vmem:[%s378_s2 + $0x8] sm:$0xff]  ;;  %v63_v7 = vld [vmem:[%s379_s5 + $0x18] sm:$0xff] }
   0x3   :  { %35 = vperm.xlu0 %249, %v29_v2   ;;  %66 = vperm.xlu2 %251, %v60_v3   ;;  %v61_v6 = vld [vmem:[%s379_s5 + $0x8] sm:$0xff]  ;;  %v62_v8 = vld [vmem:[%s379_s5 + $0x10] sm:$0xff]  ;;  %v88_v9 = vld [vmem:[%s381_s3] sm:$0xff] }
   0x4   :  { %v90_v10 = vld [vmem:[%s381_s3 + $0x10] sm:$0xff]  ;;  %v89_v11 = vld [vmem:[%s381_s3 + $0x8] sm:$0xff]  ;;  %v91_v12 = vld [vmem:[%s381_s3 + $0x18] sm:$0xff] }
   0x5   :  { %v203_v16 = vld [vmem:[%s382_s4 + $0x18] sm:$0xff]  ;;  %v200_v17 = vld [vmem:[%s382_s4] sm:$0xff]  ;;  %v201_v18 = vld [vmem:[%s382_s4 + $0x8] sm:$0xff] }
   0x6   :  { %v202_v19 = vld [vmem:[%s382_s4 + $0x10] sm:$0xff]  ;;  %v265_v37 = vld [vmem:[%s380_s0] ss:$0 sm:$0xff] }
   0x7   :  { %v28_v38 = vld [vmem:[%s383_s1] sm:$0xf] }
   0x8   :  { %v112_v39 = vperm.slane %v28_v38, 0  ;;  %v137_v44 = vperm.slane %v28_v38, 1  ;;  %v162_v49 = vperm.slane %v28_v38, 2  ;;  %v187_v59 = vperm.slane %v28_v38, 3 }
   0xa   :  { %50 = vperm.xlu1 %250, %v32_v4  }
   0xb   :  { %40 = vperm.xlu0 %249, %v30_v5   ;;  %71 = vperm.xlu2 %251, %v61_v6  }
  0x12   :  { %81 = vperm.xlu1 %250, %v63_v7  }
  0x13   :  { %76 = vperm.xlu0 %249, %v62_v8   ;;  %94 = vperm.xlu2 %251, %v88_v9  }
  0x1a   :  { %104 = vperm.xlu1 %250, %v90_v10  }
  0x1b   :  { %99 = vperm.xlu0 %249, %v89_v11   ;;  %109 = vperm.xlu2 %251, %v91_v12  }
  0x22   :  { %253 = vset.pattern.permute.xlu1 %v275_v13 }
  0x23   :  { %252 = vset.pattern.permute.xlu0 %v275_v13  ;;  %126 = vperm.xlu1 %253, %v89_v11  }
  0x24   :  { %122 = vperm.xlu0 %252, %v88_v9   ;;  %254 = vset.pattern.permute.xlu2 %v275_v13 }
  0x25   :  { %130 = vperm.xlu2 %254, %v90_v10  }
  0x2b   :  { %134 = vperm.xlu1 %253, %v91_v12  }
  0x2c   :  { %256 = vset.pattern.permute.xlu0 %v276_v14 }
  0x2d   :  { %151 = vperm.xlu0 %256, %v89_v11   ;;  %255 = vset.pattern.permute.xlu2 %v276_v14 }
  0x2e   :  { %147 = vperm.xlu2 %255, %v88_v9  }
  0x33   :  { %257 = vset.pattern.permute.xlu1 %v276_v14 }
  0x34   :  { %155 = vperm.xlu1 %257, %v90_v10  }
  0x35   :  { %261 = vset.pattern.permute.xlu0 %v277_v15 }
  0x36   :  { %180 = vperm.xlu0 %261, %v90_v10   ;;  %258 = vset.pattern.permute.xlu2 %v277_v15 }
  0x37   :  { %172 = vperm.xlu2 %258, %v88_v9  }
  0x3c   :  { %259 = vset.pattern.permute.xlu1 %v277_v15 }
  0x3d   :  { %176 = vperm.xlu1 %259, %v89_v11  }
  0x3e   :  { %264 = vset.pattern.permute.xlu0 %v274_v0 }
  0x3f   :  { %260 = vset.pattern.permute.xlu2 %v276_v14  ;;  %221 = vperm.xlu0 %264, %v203_v16  }
  0x40   :  { %159 = vperm.xlu2 %260, %v91_v12  }
  0x45   :  { %184 = vperm.xlu1 %259, %v91_v12  }
  0x48   :  { %262 = vset.pattern.permute.xlu2 %v274_v0 }
  0x49   :  { %206 = vperm.xlu2 %262, %v200_v17  }
  0x4d   :  { %263 = vset.pattern.permute.xlu1 %v274_v0 }
  0x4e   :  { %211 = vperm.xlu1 %263, %v201_v18  }
  0x51   :  { %216 = vperm.xlu2 %262, %v202_v19  }
  0x5d   :  { %v67_v20 = vpop.permute.xlu2 %66 }
  0x65   :  { %v72_v21 = vpop.permute.xlu2 %71 }
  0x6d   :  { %v95_v25 = vpop.permute.xlu2 %94 }
  0x6e   :  { %v113_v42 = vmul.f32 %v112_v39, %v95_v25 }
  0x74   :  { %v46_v22 = vpop.permute.xlu1 %45 }
  0x75   :  { %v36_v23 = vpop.permute.xlu0 %35  ;;  %v110_v28 = vpop.permute.xlu2 %109  ;;  %v58_v47 = vmul.f32 %v265_v37, %v46_v22 }
  0x76   :  { %v56_v40 = vmul.f32 %v265_v37, %v36_v23  ;;  %v116_v3 = vmul.f32 %v112_v39, %v110_v28 }
  0x78   :  { %v84_v43 = vadd.f32 %v67_v20, %v56_v40 }
  0x7a   :  { %v117_v53 = vadd.f32 %v113_v42, %v84_v43 }
  0x7c   :  { %v51_v24 = vpop.permute.xlu1 %50 }
  0x7d   :  { %v41_v26 = vpop.permute.xlu0 %40  ;;  %v59_v57 = vmul.f32 %v265_v37, %v51_v24 }
  0x7e   :  { %v57_v51 = vmul.f32 %v265_v37, %v41_v26 }
  0x7f   :  { %v131_v31 = vpop.permute.xlu2 %130 }
  0x80   :  { %v140_v54 = vmul.f32 %v137_v44, %v131_v31  ;;  %v85_v61 = vadd.f32 %v72_v21, %v57_v51 }
  0x84   :  { %v82_v27 = vpop.permute.xlu1 %81 }
  0x85   :  { %v77_v29 = vpop.permute.xlu0 %76  ;;  %v87_v63 = vadd.f32 %v82_v27, %v59_v57 }
  0x86   :  { %v86_v52 = vadd.f32 %v77_v29, %v58_v47 }
  0x87   :  { %v120_v13 = vadd.f32 %v116_v3, %v87_v63 }
  0x88   :  { %v148_v34 = vpop.permute.xlu2 %147 }
  0x89   :  { %v163_v58 = vmul.f32 %v162_v49, %v148_v34 }
  0x8c   :  { %v105_v30 = vpop.permute.xlu1 %104 }
  0x8d   :  { %v100_v32 = vpop.permute.xlu0 %99  ;;  %v115_v48 = vmul.f32 %v112_v39, %v105_v30 }
  0x8e   :  { %v114_v56 = vmul.f32 %v112_v39, %v100_v32 }
  0x8f   :  { %v119_v55 = vadd.f32 %v115_v48, %v86_v52 }
  0x90   :  { %v118_v4 = vadd.f32 %v114_v56, %v85_v61 }
  0x91   :  { %v173_v41 = vpop.permute.xlu2 %172  ;;  %v144_v5 = vadd.f32 %v140_v54, %v119_v55 }
  0x92   :  { %v188_v7 = vmul.f32 %v187_v59, %v173_v41 }
  0x95   :  { %v127_v33 = vpop.permute.xlu1 %126 }
  0x96   :  { %v123_v35 = vpop.permute.xlu0 %122  ;;  %v139_v0 = vmul.f32 %v137_v44, %v127_v33 }
  0x97   :  { %v138_v50 = vmul.f32 %v137_v44, %v123_v35 }
  0x98   :  { %v143_v14 = vadd.f32 %v139_v0, %v118_v4 }
  0x99   :  { %v142_v60 = vadd.f32 %v138_v50, %v117_v53 }
  0x9a   :  { %v160_v1 = vpop.permute.xlu2 %159 }
  0x9b   :  { %v167_v8 = vadd.f32 %v163_v58, %v142_v60  ;;  %v166_v17 = vmul.f32 %v162_v49, %v160_v1 }
  0x9d   :  { %v135_v36 = vpop.permute.xlu1 %134  ;;  %v192_v16 = vadd.f32 %v188_v7, %v167_v8 }
  0x9e   :  { %v141_v9 = vmul.f32 %v137_v44, %v135_v36 }
  0x9f   :  { %v152_v45 = vpop.permute.xlu0 %151  ;;  %266 = vtanh.f32 %v192_v16 }
  0xa0   :  { %v164_v10 = vmul.f32 %v162_v49, %v152_v45  ;;  %v145_v18 = vadd.f32 %v141_v9, %v120_v13 }
  0xa2   :  { %v168_v19 = vadd.f32 %v164_v10, %v143_v14  ;;  %v170_v24 = vadd.f32 %v166_v17, %v145_v18 }
  0xa3   :  { %v207_v23 = vpop.permute.xlu2 %206 }
  0xa5   :  { %v267_v27 = vpop.eup %266 }
  0xa6   :  { %v156_v46 = vpop.permute.xlu1 %155  ;;  %v224_v32 = vmul.f32 %v267_v27, %v207_v23 }
  0xa7   :  { %v165_v62 = vmul.f32 %v162_v49, %v156_v46  ;;  %v238_v46 = vstv %s384_s6 }
  0xa8   :  { %v181_v2 = vpop.permute.xlu0 %180 }
  0xa9   :  { %v169_v11 = vadd.f32 %v165_v62, %v144_v5  ;;  %v190_v12 = vmul.f32 %v187_v59, %v181_v2 }
  0xab   :  { %v194_v20 = vadd.f32 %v190_v12, %v169_v11  ;;  %v217_v30 = vpop.permute.xlu2 %216 }
  0xad   :  { %268 = vtanh.f32 %v194_v20 }
  0xaf   :  { %v177_v6 = vpop.permute.xlu1 %176 }
  0xb0   :  { %v189_v15 = vmul.f32 %v187_v59, %v177_v6 }
  0xb1   :  { %v222_v35 = vpop.permute.xlu0 %221 }
  0xb2   :  { %v193_v21 = vadd.f32 %v189_v15, %v168_v19 }
  0xb3   :  { %v269_v28 = vpop.eup %268 }
  0xb4   :  { %270 = vtanh.f32 %v193_v21  ;;  %v226_v36 = vmul.f32 %v269_v28, %v217_v30 }
  0xb7   :  { %v185_v22 = vpop.permute.xlu1 %184 }
  0xb8   :  { %v191_v25 = vmul.f32 %v187_v59, %v185_v22 }
  0xba   :  { %v195_v26 = vadd.f32 %v191_v25, %v170_v24  ;;  %v271_v29 = vpop.eup %270 }
  0xbc   :  { %272 = vtanh.f32 %v195_v26 }
  0xc0   :  { %v212_v31 = vpop.permute.xlu1 %211 }
  0xc1   :  { %v225_v33 = vmul.f32 %v271_v29, %v212_v31 }
  0xc2   :  { %v273_v34 = vpop.eup %272 }
  0xc3   :  { %v228_v37 = vadd.f32 %v225_v33, %v224_v32  ;;  %v227_v38 = vmul.f32 %v273_v34, %v222_v35 }
  0xc5   :  { %v229_v39 = vadd.f32 %v228_v37, %v226_v36 }
  0xc7   :  { %v230_v40 = vadd.f32 %v229_v39, %v227_v38 }
  0xc9   :  { %v231_v41 = vrot.slane %v230_v40, 4 }
  0xcb   :  { %v232_v42 = vadd.f32 %v231_v41, %v230_v40 }
  0xcd   :  { %v233_v43 = vrot.slane %v232_v42, 2 }
  0xcf   :  { %v234_v44 = vadd.f32 %v233_v43, %v232_v42 }
  0xd1   :  { %v235_v45 = vrot.slane %v234_v44, 1 }
  0xd3   :  { %v236_v47 = vadd.f32 %v235_v45, %v234_v44 }
  0xd5   :  { %v239_v48 = vadd.f32 %v238_v46, %v236_v47 }
  0xd7   :  { %240 = vst [vmem:[%s385_s7] sm:$0x1] %v239_v48 }

</bundles_post_ra>
